<compile_context>
chip_gen: v6e
topology: v6e:2x2x1
jax: 0.10.0
libtpu: 0.0.40
codegen_flags: <defaults>
</compile_context>

<pallas_src>
import jax
import jax.numpy as jnp
from jax.experimental import pallas as pl
from jax.experimental.pallas import tpu as pltpu


def _spectral_normalize(w):
    """Mimic nn.utils.spectral_norm at init: divide weight by its largest s.v."""
    mat = w.reshape(w.shape[0], -1)
    sigma = jnp.linalg.svd(mat, compute_uv=False)[0]
    return w / sigma


def _discriminator_kernel(a_ref, b_ref, wea_ref, web_ref, beff_ref, out_ref):
    # a_ref, b_ref : [B, Cin, L]   native NCL layout (no wrapper transpose)
    # wea_ref/web_ref : [1, Cin]   fc folded into the path conv weights
    # beff_ref : [1, 1]            folded bias
    # out_ref : [1, B]             lane-dense output (wrapper reshapes to [B,1])
    inv_l = 1.0 / a_ref.shape[-1]
    batch = a_ref.shape[0]

    # .mean(dim=2) pulled in front of the (linear) projection: lane reduce.
    a_mean = jnp.sum(a_ref[...], axis=-1) * inv_l        # [B, Cin]
    b_mean = jnp.sum(b_ref[...], axis=-1) * inv_l        # [B, Cin]

    # Folded projection + fc: pure VPU multiply + lane reduce, no MXU needed.
    z = a_mean * wea_ref[...] + b_mean * web_ref[...]    # [B, Cin]
    logits = jnp.sum(z, axis=-1).reshape(1, batch) + beff_ref[...]   # [1, B]
    out_ref[...] = logits.astype(out_ref.dtype)


@jax.jit
def discriminator_forward(a_ncl, b_ncl, c_ncl, folded):
    # c_ncl accepted for signature parity with the PyTorch forward; unused.
    del c_ncl
    a = a_ncl.astype(jnp.float32)
    b = b_ncl.astype(jnp.float32)
    B = a.shape[0]

    vmem = pl.BlockSpec(memory_space=pltpu.MemorySpace.VMEM)
    logits_row = pl.pallas_call(
        _discriminator_kernel,
        out_shape=jax.ShapeDtypeStruct((1, B), jnp.float32),
        in_specs=[vmem] * 5,
        out_specs=vmem,
    )(a, b, folded['w_eff_a'], folded['w_eff_b'], folded['b_eff'])
    return logits_row.reshape(B, 1)


def init_params(key, in_channels=6, num_channels=32):
    """Raw (PyTorch-layout-equivalent) parameters, spectral-normalized at init."""
    ks = jax.random.split(key, 8)

    # Path conv weights in PyTorch layout [NC, Cin, 1]; spectral-normalized,
    # then transposed to [Cin, NC].
    def make_path_w(k):
        w = jax.random.normal(k, (num_channels, in_channels, 1), jnp.float32) * 0.1
        w = _spectral_normalize(w)
        return jnp.transpose(w[:, :, 0], (1, 0))            # [Cin, NC]

    wa = make_path_w(ks[0])
    wb = make_path_w(ks[1])
    _wc = make_path_w(ks[2])   # path c exists in __init__, unused in forward
    ba = jax.random.normal(ks[3], (1, num_channels), jnp.float32) * 0.01
    bb = jax.random.normal(ks[4], (1, num_channels), jnp.float32) * 0.01
    _bc = jax.random.normal(ks[5], (1, num_channels), jnp.float32) * 0.01

    # fc: nn.Linear(2*NC, 1) — PyTorch weight [1, 2*NC]; spectral-normalized,
    # stored transposed as [2*NC, 1].
    fc_w_pt = jax.random.normal(ks[6], (1, 2 * num_channels), jnp.float32) * 0.1
    fc_w_pt = _spectral_normalize(fc_w_pt)
    fc_w = jnp.transpose(fc_w_pt, (1, 0))                    # [2*NC, 1]
    fc_b = jax.random.normal(ks[7], (1, 1), jnp.float32) * 0.01

    return {'wa': wa, 'ba': ba, 'wb': wb, 'bb': bb, 'fc_w': fc_w, 'fc_b': fc_b}


def fold_params(raw):
    """Fold the fc layer into the path weights (exact, since everything after
    the L-mean is linear). Host-side, done once."""
    nc = raw['ba'].shape[1]
    fcw_a = raw['fc_w'][:nc, :]                              # [NC, 1]
    fcw_b = raw['fc_w'][nc:, :]                              # [NC, 1]
    w_eff_a = (raw['wa'] @ fcw_a).T                          # [1, Cin]
    w_eff_b = (raw['wb'] @ fcw_b).T                          # [1, Cin]
    b_eff = raw['ba'] @ fcw_a + raw['bb'] @ fcw_b + raw['fc_b']   # [1, 1]
    return {'w_eff_a': w_eff_a, 'w_eff_b': w_eff_b, 'b_eff': b_eff}


def _reference_forward(a, b, raw):
    """Un-fused pure-JAX reference matching the PyTorch forward exactly."""
    fa = jnp.einsum('bcl,cn->bnl', a, raw['wa']) + raw['ba'][:, :, None]
    fb = jnp.einsum('bcl,cn->bnl', b, raw['wb']) + raw['bb'][:, :, None]
    feats = jnp.concatenate([fa, fb], axis=1).mean(axis=2)   # [B, 2*NC]
    return feats @ raw['fc_w'] + raw['fc_b']                 # [B, 1]


if __name__ == "__main__":
    key = jax.random.PRNGKey(0)
    k_a, k_b, k_c, k_p = jax.random.split(key, 4)

    B, Cin, L, NC = 2, 6, 16, 32
    a = jax.random.normal(k_a, (B, Cin, L), jnp.float32)   # NCL, like PyTorch
    b = jax.random.normal(k_b, (B, Cin, L), jnp.float32)
    c = jax.random.normal(k_c, (B, Cin, L), jnp.float32)   # unused in forward

    raw_params = init_params(k_p, in_channels=Cin, num_channels=NC)
    folded_params = fold_params(raw_params)

    logits = discriminator_forward(a, b, c, folded_params)
    jax.block_until_ready(logits)
    assert logits.shape == (B, 1), logits.shape

    ref = _reference_forward(a, b, raw_params)
    assert jnp.allclose(logits, ref, rtol=1e-4, atol=1e-5), (logits, ref)

    print("KERNEL_OK")
</pallas_src>

<mosaic_0001>
module attributes {stable_mosaic.version = 11 : i64} {
  func.func @_discriminator_kernel(%arg0: memref<2x6x16xf32, #tpu.memory_space<vmem>>, %arg1: memref<2x6x16xf32, #tpu.memory_space<vmem>>, %arg2: memref<1x6xf32, #tpu.memory_space<vmem>>, %arg3: memref<1x6xf32, #tpu.memory_space<vmem>>, %arg4: memref<1x1xf32, #tpu.memory_space<vmem>>, %arg5: memref<1x2xf32, #tpu.memory_space<vmem>>) attributes {dimension_semantics = [], scalar_prefetch = 0 : i64, scratch_operands = 0 : i64, tpu.core_type = #tpu.core_type<tc>} {
    %c0 = arith.constant 0 : index
    %c0_0 = arith.constant 0 : index
    %c0_1 = arith.constant 0 : index
    %0 = vector.load %arg0[%c0, %c0_0, %c0_1] : memref<2x6x16xf32, #tpu.memory_space<vmem>>, vector<2x6x16xf32>
    %cst = arith.constant dense<0.000000e+00> : vector<2x6xf32>
    %1 = vector.multi_reduction <add>, %0, %cst [2] : vector<2x6x16xf32> to vector<2x6xf32>
    %cst_2 = arith.constant 6.250000e-02 : f32
    %2 = vector.broadcast %cst_2 : f32 to vector<2x6xf32>
    %3 = arith.mulf %1, %2 : vector<2x6xf32>
    %c0_3 = arith.constant 0 : index
    %c0_4 = arith.constant 0 : index
    %c0_5 = arith.constant 0 : index
    %4 = vector.load %arg1[%c0_3, %c0_4, %c0_5] : memref<2x6x16xf32, #tpu.memory_space<vmem>>, vector<2x6x16xf32>
    %cst_6 = arith.constant dense<0.000000e+00> : vector<2x6xf32>
    %5 = vector.multi_reduction <add>, %4, %cst_6 [2] : vector<2x6x16xf32> to vector<2x6xf32>
    %cst_7 = arith.constant 6.250000e-02 : f32
    %6 = vector.broadcast %cst_7 : f32 to vector<2x6xf32>
    %7 = arith.mulf %5, %6 : vector<2x6xf32>
    %c0_8 = arith.constant 0 : index
    %c0_9 = arith.constant 0 : index
    %8 = vector.load %arg2[%c0_8, %c0_9] : memref<1x6xf32, #tpu.memory_space<vmem>>, vector<1x6xf32>
    %9 = vector.broadcast %8 : vector<1x6xf32> to vector<2x6xf32>
    %10 = arith.mulf %3, %9 : vector<2x6xf32>
    %c0_10 = arith.constant 0 : index
    %c0_11 = arith.constant 0 : index
    %11 = vector.load %arg3[%c0_10, %c0_11] : memref<1x6xf32, #tpu.memory_space<vmem>>, vector<1x6xf32>
    %12 = vector.broadcast %11 : vector<1x6xf32> to vector<2x6xf32>
    %13 = arith.mulf %7, %12 : vector<2x6xf32>
    %14 = arith.addf %10, %13 : vector<2x6xf32>
    %cst_12 = arith.constant dense<0.000000e+00> : vector<2xf32>
    %15 = vector.multi_reduction <add>, %14, %cst_12 [1] : vector<2x6xf32> to vector<2xf32>
    %16 = vector.shape_cast %15 : vector<2xf32> to vector<1x2xf32>
    %c0_13 = arith.constant 0 : index
    %c0_14 = arith.constant 0 : index
    %17 = vector.load %arg4[%c0_13, %c0_14] : memref<1x1xf32, #tpu.memory_space<vmem>>, vector<1x1xf32>
    %18 = vector.broadcast %17 : vector<1x1xf32> to vector<1x2xf32>
    %19 = arith.addf %16, %18 : vector<1x2xf32>
    %c0_15 = arith.constant 0 : index
    %c0_16 = arith.constant 0 : index
    %20 = vector.load %arg5[%c0_15, %c0_16] : memref<1x2xf32, #tpu.memory_space<vmem>>, vector<1x2xf32>
    tpu.vector_store %arg5[%c0_15, %c0_16], %19 {strides = array<i32>} : memref<1x2xf32, #tpu.memory_space<vmem>>, vector<1x2xf32>,
    return
  }
}

</mosaic_0001>

<bundles_post_ra>
// kernel: discriminator_forward.1
= control target key start
LH: loop header
LB: loop body
LE: loop exit
PB: predicated region body
PF: predicated region fallthrough
CT: control target
= control target key end

     0   :  { %s212_s0 = inlined_call_operand.vmem [shape: f32[2,6,16], index: 0, kind: input, shape index: {}]   ;;  %s213_s1 = inlined_call_operand.vmem [shape: f32[2,6,16], index: 1, kind: input, shape index: {}]   ;;  %s214_s2 = inlined_call_operand.vmem [shape: f32[1,6], index: 2, kind: input, shape index: {}]   ;;  %s215_s3 = inlined_call_operand.vmem [shape: f32[1,6], index: 3, kind: input, shape index: {}]   ;;  %s216_s4 = inlined_call_operand.<no memory space> [shape: f32[1,1], index: 4, kind: input, shape index: {}]   ;;  %s217_s5 = inlined_call_operand.hbm [shape: f32[1,2], index: 5, kind: output, shape index: {}]  }
   0x1   :  { %v10_v0 = vstv %s216_s4 }
   0x2   :  { %11 = vst [vmem:[#allocation2] sm:$0x1] %v10_v0 }
   0x3   :  { %vm25_vm0 = vcmask 128000   ;;  %v34_v1 = vld [vmem:[%s213_s1] sm:$0x3f]  ;;  %v35_v5 = vld [vmem:[%s213_s1 + $0x8] sm:$0x3f] }
   0x4   :  { %v23_v2 = vld [vmem:[%s212_s0] sm:$0x3f]  ;;  %v36_v3 = vsel %vm25_vm0, %v34_v1, 0.0  ;;  %v24_v6 = vld [vmem:[%s212_s0 + $0x8] sm:$0x3f]  ;;  %v39_v7 = vsel %vm25_vm0, %v35_v5, 0.0 }
   0x5   :  { %v26_v4 = vsel %vm25_vm0, %v23_v2, 0.0  ;;  %37 = vadd.xlane.f32.xlu1 %v36_v3  ;;  %v29_v8 = vsel %vm25_vm0, %v24_v6, 0.0 }
   0x6   :  { %27 = vadd.xlane.f32.xlu0 %v26_v4 }
   0x7   :  { %12 = vsyncpa [#allocation4], 0  ;;  %v129_v9 = vld [vmem:[%s215_s3] ss:$0 sm:$0xff]  ;;  %v156_v10 = vmov 0   ;;  %v78_v29 = vlaneseq  ;;  %vm88_vm1 = vcmask 1041409  }
   0x8   :  { %133 = vset.pattern.permute.xlu0 %v156_v10  ;;  %132 = vset.pattern.permute.xlu1 %v156_v10  ;;  %v128_v11 = vld [vmem:[%s214_s2] ss:$0 sm:$0xff]  ;;  %vm91_vm2 = vcmask 41984   ;;  %s157_s0 = smov [#allocation3]   ;;  %vm112_vm3 = vcmask 8192  }
   0x9   :  { %40 = vadd.xlane.f32.xlu1 %v39_v7  ;;  %v95_v28 = vld [vmem:[#allocation2] sm:$0x1]  ;;  %v79_v30 = vand.u32 127, %v78_v29  ;;  %v81_v31 = vshrl.u32 %v78_v29, 7  ;;  %s120_s2 = sshll.u32 %s157_s0, 4  ;;  %s121_s2 = int_to_ptr.vmem [resolvable:$true] %s120_s2 }
   0xa   :  { %30 = vadd.xlane.f32.xlu0 %v29_v8  ;;  %s134_s3 = scalar_lea.vmem %s121_s2, 16  ;;  %s138_s30 = scalar_lea.vmem %s121_s2, 32 }
   0xb   :  { %v82_v33 = vsub.s32 %v79_v30, %v81_v31  ;;  %v103_v39 = vsub.s32 0, %v81_v31  ;;  %p135_p0 = scmp.ne.s32.totalorder %s121_s2, %s134_s3  ;;  %p139_p1 = scmp.lt.s32.totalorder %s121_s2, %s121_s2 }
   0xc   :  { %p140_p2 = scmp.lt.s32.totalorder %s138_s30, %s134_s3 }
   0xe   :  { %p141_p3 = por %p140_p2, %p139_p1 }
  0x10   :  { %p142_p4 = pnand %p141_p3, %p135_p0 }
  0x1a   :  { %63 = vbcast.lane.b32.xlu1 %v129_v9, 256 }
  0x20   :  { %51 = vbcast.lane.b32.xlu0 %v128_v11, 256 }
  0x8e   :  { %v38_v12 = vpop.xlane.xlu1 %37 }
  0x8f   :  { %v28_v13 = vpop.xlane.xlu0 %27  ;;  %v42_v16 = vmul.f32 0.0625, %v38_v12 }
  0x90   :  { %v32_v17 = vmul.f32 0.0625, %v28_v13 }
  0x92   :  { %v41_v14 = vpop.xlane.xlu1 %40 }
  0x93   :  { %v31_v15 = vpop.xlane.xlu0 %30  ;;  %v43_v20 = vmul.f32 0.0625, %v41_v14 }
  0x94   :  { %v33_v21 = vmul.f32 0.0625, %v31_v15 }
  0x96   :  { %v64_v18 = vpop.permute.xlu1 %63 }
  0x97   :  { %v52_v19 = vpop.permute.xlu0 %51  ;;  %v66_v22 = vmul.f32 %v64_v18, %v42_v16  ;;  %v67_v24 = vmul.f32 %v64_v18, %v43_v20 }
  0x98   :  { %v54_v23 = vmul.f32 %v52_v19, %v32_v17  ;;  %v55_v25 = vmul.f32 %v52_v19, %v33_v21 }
  0x9a   :  { %v68_v26 = vadd.f32 %v66_v22, %v54_v23  ;;  %v69_v27 = vadd.f32 %v67_v24, %v55_v25 }
  0x9c   :  { %73 = vperm.xlu1 %132, %v68_v26  }
  0xa0   :  { %76 = vperm.xlu1 %132, %v69_v27  }
  0xa4   :  { %98 = vperm.xlu1 %132, %v95_v28  }
 0x117   :  { %v74_v32 = vpop.permute.xlu1 %73 }
 0x118   :  { %v83_v35 = vrot.slane %v74_v32, %v82_v33 }
 0x11b   :  { %v77_v34 = vpop.permute.xlu1 %76 }
 0x11c   :  { %v87_v36 = vrot.slane %v77_v34, %v82_v33 }
 0x11e   :  { %v89_v37 = vsel %vm88_vm1, %v87_v36, %v83_v35 }
 0x11f   :  { %v92_v38 = vsel %vm91_vm2, %v89_v37, 0.0  ;;  %v99_v40 = vpop.permute.xlu1 %98 }
 0x120   :  { %93 = vadd.xlane.f32.xlu0 %v92_v38  ;;  %v104_v41 = vrot.slane %v99_v40, %v103_v39 }
 0x1a9   :  { %v94_v42 = vpop.xlane.xlu0 %93 }
 0x1aa   :  { %v105_v43 = vadd.f32 %v104_v41, %v94_v42 }
 0x1ac   :  { %v110_v44 = vrot.slane %v105_v43, %v82_v33 }
 0x1ae   :  { %113 = vst.msk [vmem:[#allocation3] sm:$0x1] %vm112_vm3, %v110_v44 }
 0x1af   :  { %145 = shalt.err (!%p142_p4)
}
 0x1b0   :  { %123 = dma.vmem_to_hbm [thread:$0]  %s121_s2, 16, %s217_s5, [#allocation4]  }
 0x1b1   :  { %154 = dma.done.wait [#allocation4], 16  }
 0x1b2   :  { %155 = vsyncadd [#allocation4], 4294967280 }
 0x1b3   :  { %127 = vsyncpa [#allocation4], 1 }

</bundles_post_ra>
